<compile_context>
chip_gen: v5e
topology: v5e:2x2
jax: 0.10.0
libtpu: 0.0.40
codegen_flags: <defaults>
</compile_context>

<pallas_src>
import functools

import jax
import jax.numpy as jnp
from jax import lax
from jax.experimental import pallas as pl
from jax.experimental.pallas import tpu as pltpu


def _ls_ce_kernel(logits_ref, tgt_ref, smooth_out, nll_out,
                  *, n_rows, ignore_index, block_rows, num_classes):
    i = pl.program_id(0)
    tn = block_rows

    # Global row ids for this tile; rows >= n_rows are the clipped tail of the last
    # block (stale VMEM) and are masked out at accumulation time below.
    row_ids = i * tn + lax.broadcasted_iota(jnp.int32, (tn, 1), 0)      # (TN, 1)
    row_valid = row_ids < n_rows                                        # (TN, 1) bool

    # Stream logits in their native dtype; upcast in-kernel.
    xf = logits_ref[...].astype(jnp.float32)                            # (TN, C)

    # Numerically stable log-sum-exp over the class (lane) axis.
    m = jnp.max(xf, axis=-1, keepdims=True)                             # (TN, 1)
    sumexp = jnp.sum(jnp.exp(xf - m), axis=-1, keepdims=True)           # (TN, 1)
    lse = m + jnp.log(sumexp)                                           # (TN, 1)

    # Smoothing term per row:  -sum_c logp = C*lse - sum_c x   (logp never materialized).
    sum_x = jnp.sum(xf, axis=-1, keepdims=True)                         # (TN, 1)
    row_smooth = num_classes * lse - sum_x                              # (TN, 1)

    # NLL term per row: gather x[i, t_i] via a broadcast one-hot compare on x,
    # then logp[i, t_i] = x[i, t_i] - lse_i.
    t = tgt_ref[...]                                                    # (TN, 1) int32
    cls = lax.broadcasted_iota(jnp.int32, (1, num_classes), 1)          # (1, C)
    g = jnp.sum(jnp.where(cls == t, xf, 0.0), axis=-1, keepdims=True)   # (TN, 1)
    row_nll = lse - g                                                   # (TN, 1)

    keep = row_valid & (t != ignore_index)                              # (TN, 1) bool

    # Per-block scalar partials (masks select 0.0 for invalid/ignored rows, so NaN/Inf
    # from stale tail rows never propagates).
    smooth_part = jnp.sum(jnp.where(row_valid, row_smooth, 0.0), keepdims=True)  # (1,1)
    nll_part = jnp.sum(jnp.where(keep, row_nll, 0.0), keepdims=True)             # (1,1)

    smooth_out[...] = smooth_part[None]                                 # (1,1,1)
    nll_out[...] = nll_part[None]


def _pick_block_rows(n, c, dtype):
    """Largest dtype-aligned row tile with ~4 MiB of logits per tile (double-buffered
    ~8 MiB, well inside the 32 MiB scoped-VMEM limit on every TPU generation)."""
    itemsize = jnp.dtype(dtype).itemsize
    row_align = {4: 8, 2: 16, 1: 32}.get(itemsize, 8)
    c_lanes = max(pl.cdiv(c, 128) * 128, 128)      # VMEM lane padding of the class dim
    tile_budget = 4 * 1024 * 1024                  # bytes of logits per tile
    rows = tile_budget // (c_lanes * itemsize)
    rows = max(row_align, (rows // row_align) * row_align)
    rows = min(rows, 2048)
    if n <= rows:
        # A single block equal to the full first dim is always a legal block shape.
        return int(n)
    return int(rows)


def label_smoothing_cross_entropy(logits, target, *, eps=0.1, reduction="mean",
                                  ignore_index=-100, block_rows=None):
    """logits: [..., C] float, target: [...] int. Returns a scalar loss (float32)."""
    assert reduction in ("mean", "sum")
    if logits.ndim > 2:
        c_last = logits.shape[-1]
        logits = logits.reshape(-1, c_last)
        target = target.reshape(-1)
    n, c = logits.shape

    if block_rows is None:
        block_rows = _pick_block_rows(n, c, logits.dtype)
    num_blocks = pl.cdiv(n, block_rows)

    target_col = target.reshape(n, 1).astype(jnp.int32)

    kernel = functools.partial(
        _ls_ce_kernel, n_rows=n, ignore_index=int(ignore_index),
        block_rows=block_rows, num_classes=c)

    part_shape = jax.ShapeDtypeStruct((num_blocks, 1, 1), jnp.float32)
    part_spec = pl.BlockSpec((1, 1, 1), lambda i: (i, 0, 0))

    smooth_p, nll_p = pl.pallas_call(
        kernel,
        out_shape=(part_shape, part_shape),
        grid_spec=pltpu.PrefetchScalarGridSpec(
            num_scalar_prefetch=0,
            grid=(num_blocks,),
            in_specs=[
                pl.BlockSpec((block_rows, c), lambda i: (i, 0)),   # logits tile (streamed)
                pl.BlockSpec((block_rows, 1), lambda i: (i, 0)),   # target tile
            ],
            out_specs=(part_spec, part_spec),
        ),
        compiler_params=pltpu.CompilerParams(
            dimension_semantics=("parallel",),
            vmem_limit_bytes=32 * 1024 * 1024,
        ),
    )(logits, target_col)

    smooth_sum = jnp.sum(smooth_p)
    nll_sum = jnp.sum(nll_p)
    if reduction == "mean":
        # Valid-row count computed from the tiny target vector in the wrapper
        # (dropped from the kernel per the perf review).
        cnt = jnp.sum(target != ignore_index).astype(jnp.float32)
        smooth = smooth_sum / jnp.float32(n)
        # NOTE: if every target equals ignore_index this divides by zero (NaN/Inf),
        # matching torch.nn.functional.nll_loss(reduction='mean') behaviour.
        nll = nll_sum / cnt
    else:  # "sum"
        smooth = smooth_sum
        nll = nll_sum
    return smooth * (eps / c) + (1.0 - eps) * nll


def _reference(logits, target, *, eps=0.1, reduction="mean", ignore_index=-100):
    c = logits.shape[-1]
    logits = logits.reshape(-1, c).astype(jnp.float32)
    target = target.reshape(-1)
    logp = jax.nn.log_softmax(logits, axis=-1)
    if reduction == "sum":
        smooth = -logp.sum()
    else:
        smooth = (-logp.sum(axis=-1)).mean()
    valid = target != ignore_index
    safe_t = jnp.where(valid, target, 0)
    picked = jnp.take_along_axis(logp, safe_t[:, None], axis=1)[:, 0]
    nll_per = jnp.where(valid, -picked, 0.0)
    if reduction == "sum":
        nll = nll_per.sum()
    else:
        nll = nll_per.sum() / valid.sum()
    return smooth * eps / c + (1.0 - eps) * nll


if __name__ == "__main__":
    key = jax.random.PRNGKey(0)
    k1, k2, k3, k4 = jax.random.split(key, 4)

    # Small BertNER-like shapes: batch=2, seq=8, num_labels=32 (flattened to N=16 rows).
    B, S, C = 2, 8, 32
    logits = jax.random.normal(k1, (B, S, C), dtype=jnp.float32)
    target = jax.random.randint(k2, (B, S), 0, C, dtype=jnp.int32)
    # sprinkle in a couple of ignored labels (ignore_index = -100)
    target = target.at[0, 3].set(-100).at[1, 5].set(-100)

    loss = jax.block_until_ready(
        label_smoothing_cross_entropy(logits, target, eps=0.1, reduction="mean"))
    ref = _reference(logits, target, eps=0.1, reduction="mean")
    assert jnp.allclose(loss, ref, rtol=1e-5, atol=1e-5), (loss, ref)

    # 'sum' reduction path
    loss_s = jax.block_until_ready(
        label_smoothing_cross_entropy(logits, target, eps=0.1, reduction="sum"))
    ref_s = _reference(logits, target, eps=0.1, reduction="sum")
    assert jnp.allclose(loss_s, ref_s, rtol=1e-5, atol=1e-5), (loss_s, ref_s)

    # Multi-block grid + masked tail rows (N=22 is not a multiple of block_rows=8).
    B2, S2 = 2, 11
    logits2 = jax.random.normal(k3, (B2, S2, C), dtype=jnp.float32)
    target2 = jax.random.randint(k4, (B2, S2), 0, C, dtype=jnp.int32)
    target2 = target2.at[0, 0].set(-100).at[1, 7].set(-100)

    loss2 = jax.block_until_ready(
        label_smoothing_cross_entropy(logits2, target2, block_rows=8))
    ref2 = _reference(logits2, target2)
    assert jnp.allclose(loss2, ref2, rtol=1e-5, atol=1e-5), (loss2, ref2)

    # Auto block_rows path on the same ragged shape (single clipped block).
    loss2d = jax.block_until_ready(label_smoothing_cross_entropy(logits2, target2))
    assert jnp.allclose(loss2d, ref2, rtol=1e-5, atol=1e-5), (loss2d, ref2)

    print("KERNEL_OK")
</pallas_src>

<mosaic_0001>
module attributes {stable_mosaic.version = 11 : i64} {
  func.func @_ls_ce_kernel(%arg0: i32, %arg1: memref<16x32xf32, #tpu.memory_space<vmem>>, %arg2: memref<16x1xi32, #tpu.memory_space<vmem>>, %arg3: memref<1x1x1xf32, #tpu.memory_space<vmem>>, %arg4: memref<1x1x1xf32, #tpu.memory_space<vmem>>) attributes {dimension_semantics = [#tpu.dimension_semantics<parallel>], iteration_bounds = array<i64: 1>, scalar_prefetch = 0 : i64, scratch_operands = 0 : i64, tpu.core_type = #tpu.core_type<tc>, window_params = [{transform_indices = @transform_0, window_bounds = array<i64: 16, 32>}, {transform_indices = @transform_1, window_bounds = array<i64: 16, 1>}, {transform_indices = @transform_2, window_bounds = array<i64: 1, 1, 1>}, {transform_indices = @transform_3, window_bounds = array<i64: 1, 1, 1>}]} {
    %c16_i32 = arith.constant 16 : i32
    %0 = arith.muli %arg0, %c16_i32 : i32
    %1 = tpu.iota {dimensions = array<i32: 0>} : vector<16x1xi32>
    %2 = vector.broadcast %0 : i32 to vector<16x1xi32>
    %3 = arith.addi %2, %1 : vector<16x1xi32>
    %c16_i32_0 = arith.constant 16 : i32
    %4 = vector.broadcast %c16_i32_0 : i32 to vector<16x1xi32>
    %5 = arith.cmpi slt, %3, %4 : vector<16x1xi32>
    %c0 = arith.constant 0 : index
    %c0_1 = arith.constant 0 : index
    %6 = vector.load %arg1[%c0, %c0_1] : memref<16x32xf32, #tpu.memory_space<vmem>>, vector<16x32xf32>
    %cst = arith.constant dense<0xFF800000> : vector<16xf32>
    %7 = vector.multi_reduction <maximumf>, %6, %cst [1] : vector<16x32xf32> to vector<16xf32>
    %8 = vector.shape_cast %7 : vector<16xf32> to vector<16x1xf32>
    %9 = vector.broadcast %8 : vector<16x1xf32> to vector<16x32xf32>
    %10 = arith.subf %6, %9 : vector<16x32xf32>
    %11 = math.exp %10 : vector<16x32xf32>
    %cst_2 = arith.constant dense<0.000000e+00> : vector<16xf32>
    %12 = vector.multi_reduction <add>, %11, %cst_2 [1] : vector<16x32xf32> to vector<16xf32>
    %13 = vector.shape_cast %12 : vector<16xf32> to vector<16x1xf32>
    %14 = math.log %13 : vector<16x1xf32>
    %15 = arith.addf %8, %14 : vector<16x1xf32>
    %cst_3 = arith.constant dense<0.000000e+00> : vector<16xf32>
    %16 = vector.multi_reduction <add>, %6, %cst_3 [1] : vector<16x32xf32> to vector<16xf32>
    %17 = vector.shape_cast %16 : vector<16xf32> to vector<16x1xf32>
    %cst_4 = arith.constant 3.200000e+01 : f32
    %18 = vector.broadcast %cst_4 : f32 to vector<16x1xf32>
    %19 = arith.mulf %18, %15 : vector<16x1xf32>
    %20 = arith.subf %19, %17 : vector<16x1xf32>
    %c0_5 = arith.constant 0 : index
    %c0_6 = arith.constant 0 : index
    %21 = vector.load %arg2[%c0_5, %c0_6] : memref<16x1xi32, #tpu.memory_space<vmem>>, vector<16x1xi32>
    %22 = tpu.iota {dimensions = array<i32: 1>} : vector<1x32xi32>
    %23 = vector.broadcast %22 : vector<1x32xi32> to vector<16x32xi32>
    %24 = vector.broadcast %21 : vector<16x1xi32> to vector<16x32xi32>
    %25 = arith.cmpi eq, %23, %24 : vector<16x32xi32>
    %cst_7 = arith.constant 0.000000e+00 : f32
    %26 = vector.broadcast %cst_7 : f32 to vector<16x32xf32>
    %27 = arith.select %25, %6, %26 : vector<16x32xi1>, vector<16x32xf32>
    %cst_8 = arith.constant dense<0.000000e+00> : vector<16xf32>
    %28 = vector.multi_reduction <add>, %27, %cst_8 [1] : vector<16x32xf32> to vector<16xf32>
    %29 = vector.shape_cast %28 : vector<16xf32> to vector<16x1xf32>
    %30 = arith.subf %15, %29 : vector<16x1xf32>
    %c-100_i32 = arith.constant -100 : i32
    %31 = vector.broadcast %c-100_i32 : i32 to vector<16x1xi32>
    %32 = arith.cmpi ne, %21, %31 : vector<16x1xi32>
    %33 = arith.andi %5, %32 : vector<16x1xi1>
    %cst_9 = arith.constant 0.000000e+00 : f32
    %34 = vector.broadcast %cst_9 : f32 to vector<16x1xf32>
    %35 = arith.select %5, %20, %34 : vector<16x1xi1>, vector<16x1xf32>
    %36 = vector.shape_cast %35 : vector<16x1xf32> to vector<1x16x1xf32>
    %cst_10 = arith.constant dense<0.000000e+00> : vector<1xf32>
    %37 = vector.multi_reduction <add>, %36, %cst_10 [1, 2] : vector<1x16x1xf32> to vector<1xf32>
    %38 = vector.shape_cast %37 : vector<1xf32> to vector<1x1x1xf32>
    %39 = vector.extract %38[0, 0, 0] : f32 from vector<1x1x1xf32>
    %40 = vector.broadcast %39 : f32 to vector<1x1xf32>
    %cst_11 = arith.constant 0.000000e+00 : f32
    %41 = vector.broadcast %cst_11 : f32 to vector<16x1xf32>
    %42 = arith.select %33, %30, %41 : vector<16x1xi1>, vector<16x1xf32>
    %43 = vector.shape_cast %42 : vector<16x1xf32> to vector<1x16x1xf32>
    %cst_12 = arith.constant dense<0.000000e+00> : vector<1xf32>
    %44 = vector.multi_reduction <add>, %43, %cst_12 [1, 2] : vector<1x16x1xf32> to vector<1xf32>
    %45 = vector.shape_cast %44 : vector<1xf32> to vector<1x1x1xf32>
    %46 = vector.extract %45[0, 0, 0] : f32 from vector<1x1x1xf32>
    %47 = vector.broadcast %46 : f32 to vector<1x1xf32>
    %48 = vector.shape_cast %40 : vector<1x1xf32> to vector<1x1x1xf32>
    %c0_13 = arith.constant 0 : index
    %c0_14 = arith.constant 0 : index
    %c0_15 = arith.constant 0 : index
    %49 = vector.load %arg3[%c0_13, %c0_14, %c0_15] : memref<1x1x1xf32, #tpu.memory_space<vmem>>, vector<1x1x1xf32>
    tpu.vector_store %arg3[%c0_13, %c0_14, %c0_15], %48 {strides = array<i32>} : memref<1x1x1xf32, #tpu.memory_space<vmem>>, vector<1x1x1xf32>,
    %50 = vector.shape_cast %47 : vector<1x1xf32> to vector<1x1x1xf32>
    %c0_16 = arith.constant 0 : index
    %c0_17 = arith.constant 0 : index
    %c0_18 = arith.constant 0 : index
    %51 = vector.load %arg4[%c0_16, %c0_17, %c0_18] : memref<1x1x1xf32, #tpu.memory_space<vmem>>, vector<1x1x1xf32>
    tpu.vector_store %arg4[%c0_16, %c0_17, %c0_18], %50 {strides = array<i32>} : memref<1x1x1xf32, #tpu.memory_space<vmem>>, vector<1x1x1xf32>,
    return
  }
  func.func @transform_0(%arg0: i32) -> (i32, i32) {
    %c0_i32 = arith.constant 0 : i32
    %c0_i32_0 = arith.constant 0 : i32
    return %arg0, %c0_i32 : i32, i32
  }
  func.func @transform_1(%arg0: i32) -> (i32, i32) {
    %c0_i32 = arith.constant 0 : i32
    %c0_i32_0 = arith.constant 0 : i32
    return %arg0, %c0_i32 : i32, i32
  }
  func.func @transform_2(%arg0: i32) -> (i32, i32, i32) {
    %c0_i32 = arith.constant 0 : i32
    %c0_i32_0 = arith.constant 0 : i32
    %c0_i32_1 = arith.constant 0 : i32
    return %arg0, %c0_i32, %c0_i32_0 : i32, i32, i32
  }
  func.func @transform_3(%arg0: i32) -> (i32, i32, i32) {
    %c0_i32 = arith.constant 0 : i32
    %c0_i32_0 = arith.constant 0 : i32
    %c0_i32_1 = arith.constant 0 : i32
    return %arg0, %c0_i32, %c0_i32_0 : i32, i32, i32
  }
}

</mosaic_0001>

<bundles_post_ra>
// kernel: tpu_custom_call.1
= control target key start
LH: loop header
LB: loop body
LE: loop exit
PB: predicated region body
PF: predicated region fallthrough
CT: control target
= control target key end

     0   :  { %9 = vsyncpa [#allocation3], 0  ;;  %vm26_vm0 = vcmask 261120   ;;  %v222_v3 = vmov 0   ;;  %s275_s0 = inlined_call_operand.vmem [shape: f32[16,32], index: 0, kind: input, shape index: {}]   ;;  %s276_s1 = inlined_call_operand.vmem [shape: s32[16,1], index: 1, kind: input, shape index: {}]   ;;  %s277_s2 = inlined_call_operand.hbm [shape: f32[1,1,1], index: 2, kind: output, shape index: {0}]   ;;  %s278_s3 = inlined_call_operand.hbm [shape: f32[1,1,1], index: 3, kind: output, shape index: {1}]  }
   0x1   :  { %v24_v0 = vld [vmem:[%s275_s0] sm:$0xff]  ;;  %160 = vset.pattern.permute.xlu1 %v222_v3  ;;  %161 = vset.pattern.permute.xlu0 %v222_v3 }
   0x2   :  { %v251_v1 = vld [vmem:[%s276_s1] sm:$0xff]  ;;  %v27_v2 = vsel %vm26_vm0, %v24_v0, -inf }
   0x3   :  { %10 = vsyncpa [#allocation5], 0  ;;  %28 = vmax.xlane.f32.xlu0 %v27_v2  ;;  %66 = vperm.xlu1 %160, %v251_v1   ;;  %v25_v4 = vld [vmem:[%s275_s0 + $0x8] sm:$0xff]  ;;  %v63_v7 = vlaneseq  ;;  %v51_v26 = vsel %vm26_vm0, %v24_v0, 0.0  ;;  %vm83_vm3 = vcmp.ne.s32.totalorder %v251_v1, 4294967196  ;;  %vm89_vm5 = vcmask 7168  }
   0x4   :  { %v30_v5 = vsel %vm26_vm0, %v25_v4, -inf  ;;  %v62_v6 = vld [vmem:[%s276_s1 + $0x8] sm:$0xff]  ;;  %v54_v17 = vsel %vm26_vm0, %v25_v4, 0.0  ;;  %s223_s0 = smov [#allocation2]   ;;  %s128_s22 = sshll.u32 %s277_s2, 4  ;;  %vm117_vm6 = vcmask 0   ;;  %s129_s22 = int_to_ptr.hbm [resolvable:$true] %s128_s22 }
   0x5   :  { %v64_v8 = vand.u32 127, %v63_v7  ;;  %vm84_vm4 = vcmp.ne.s32.totalorder %v62_v6, 4294967196  ;;  %s126_s1 = sshll.u32 %s223_s0, 4  ;;  %s224_s23 = smov [#allocation4]   ;;  %s127_s1 = int_to_ptr.vmem [resolvable:$true] %s126_s1 }
   0x6   :  { %s137_s24 = sshll.u32 %s224_s23, 4  ;;  %s139_s27 = sshll.u32 %s278_s3, 4  ;;  %s138_s24 = int_to_ptr.vmem [resolvable:$true] %s137_s24  ;;  %s140_s27 = int_to_ptr.hbm [resolvable:$true] %s139_s27 }
   0xb   :  { %31 = vmax.xlane.f32.xlu0 %v30_v5  ;;  %69 = vperm.xlu1 %160, %v62_v6  }
  0x75   :  { %v67_v9 = vpop.permute.xlu1 %66 }
  0x76   :  { %v29_v10 = vpop.xlane.xlu0 %28  ;;  %vm71_vm1 = vcmp.eq.s32.totalorder %v64_v8, %v67_v9 }
  0x77   :  { %v33_v11 = vsub.f32 %v24_v0, %v29_v10  ;;  %v73_v12 = vsel %vm71_vm1, %v24_v0, 0.0 }
  0x78   :  { %v75_v13 = vsel %vm26_vm0, %v73_v12, 0.0 }
  0x79   :  { %v35_v14 = vmul.f32 1.442695, %v33_v11  ;;  %76 = vadd.xlane.f32.xlu0 %v75_v13 }
  0x7b   :  { %162 = vpow2.f32 %v35_v14 }
  0x7d   :  { %v70_v15 = vpop.permute.xlu1 %69 }
  0x7e   :  { %v32_v16 = vpop.xlane.xlu0 %31  ;;  %vm72_vm2 = vcmp.eq.s32.totalorder %v64_v8, %v70_v15 }
  0x7f   :  { %v34_v18 = vsub.f32 %v25_v4, %v32_v16  ;;  %v74_v19 = vsel %vm72_vm2, %v25_v4, 0.0 }
  0x80   :  { %v78_v20 = vsel %vm26_vm0, %v74_v19, 0.0 }
  0x81   :  { %v163_v21 = vpop.eup %162  ;;  %v37_v22 = vmul.f32 1.442695, %v34_v18  ;;  %79 = vadd.xlane.f32.xlu1 %v78_v20  ;;  %55 = vadd.xlane.f32.xlu0 %v54_v17 }
  0x82   :  { %v39_v23 = vsel %vm26_vm0, %v163_v21, 0.0 }
  0x83   :  { %164 = vpow2.f32 %v37_v22  ;;  %40 = vadd.xlane.f32.xlu2 %v39_v23 }
  0x89   :  { %v165_v24 = vpop.eup %164 }
  0x8a   :  { %v42_v25 = vsel %vm26_vm0, %v165_v24, 0.0 }
  0x8b   :  { %43 = vadd.xlane.f32.xlu2 %v42_v25 }
  0x93   :  { %52 = vadd.xlane.f32.xlu2 %v51_v26 }
  0xec   :  { %v77_v31 = vpop.xlane.xlu0 %76 }
  0xf4   :  { %v80_v39 = vpop.xlane.xlu1 %79  ;;  %v56_v40 = vpop.xlane.xlu0 %55 }
  0xf6   :  { %v41_v27 = vpop.xlane.xlu2 %40 }
  0xf7   :  { %166 = vlog2.f32 %v41_v27 }
  0xfd   :  { %v167_v28 = vpop.eup %166 }
  0xfe   :  { %v46_v29 = vmul.f32 0.6931472, %v167_v28  ;;  %v44_v30 = vpop.xlane.xlu2 %43 }
  0xff   :  { %168 = vlog2.f32 %v44_v30 }
 0x100   :  { %v49_v32 = vadd.f32 %v46_v29, %v29_v10 }
 0x102   :  { %v81_v35 = vsub.f32 %v49_v32, %v77_v31  ;;  %v57_v38 = vmul.f32 32.0, %v49_v32 }
 0x104   :  { %v102_v41 = vsel %vm83_vm3, %v81_v35, 0.0 }
 0x105   :  { %v169_v33 = vpop.eup %168  ;;  %v104_v47 = vsel %vm89_vm5, %v102_v41, 0.0 }
 0x106   :  { %v48_v34 = vmul.f32 0.6931472, %v169_v33  ;;  %v53_v36 = vpop.xlane.xlu2 %52 }
 0x107   :  { %v59_v43 = vsub.f32 %v57_v38, %v53_v36 }
 0x108   :  { %v50_v37 = vadd.f32 %v48_v34, %v32_v16 }
 0x109   :  { %v90_v50 = vsel %vm89_vm5, %v59_v43, 0.0 }
 0x10a   :  { %v82_v42 = vsub.f32 %v50_v37, %v80_v39  ;;  %v58_v44 = vmul.f32 32.0, %v50_v37 }
 0x10c   :  { %v103_v45 = vsel %vm84_vm4, %v82_v42, 0.0  ;;  %v60_v46 = vsub.f32 %v58_v44, %v56_v40 }
 0x10d   :  { %v105_v48 = vsel %vm89_vm5, %v103_v45, 0.0 }
 0x10e   :  { %v106_v49 = vadd.f32 %v105_v48, %v104_v47  ;;  %v91_v51 = vsel %vm89_vm5, %v60_v46, 0.0 }
 0x10f   :  { %v92_v52 = vadd.f32 %v91_v51, %v90_v50 }
 0x110   :  { %107 = vadd.xlane.f32.xlu0 %v106_v49 }
 0x111   :  { %93 = vadd.xlane.f32.xlu2 %v92_v52 }
 0x183   :  { %v108_v53 = vpop.xlane.xlu0 %107 }
 0x184   :  { %v109_v54 = vrot.slane %v108_v53, 4  ;;  %v94_v55 = vpop.xlane.xlu2 %93 }
 0x185   :  { %v95_v56 = vrot.slane %v94_v55, 4 }
 0x186   :  { %v110_v57 = vadd.f32 %v109_v54, %v108_v53 }
 0x187   :  { %v96_v58 = vadd.f32 %v95_v56, %v94_v55 }
 0x188   :  { %v111_v59 = vrot.slane %v110_v57, 2 }
 0x189   :  { %v97_v60 = vrot.slane %v96_v58, 2 }
 0x18a   :  { %v112_v61 = vadd.f32 %v111_v59, %v110_v57 }
 0x18b   :  { %v98_v62 = vadd.f32 %v97_v60, %v96_v58 }
 0x18c   :  { %v113_v63 = vrot.slane %v112_v61, 1 }
 0x18d   :  { %v99_v0 = vrot.slane %v98_v62, 1 }
 0x18e   :  { %v114_v1 = vadd.f32 %v113_v63, %v112_v61 }
 0x18f   :  { %v100_v2 = vadd.f32 %v99_v0, %v98_v62 }
 0x191   :  { %153 = vpush %v100_v2 }
 0x192   :  { %155 = vpush %v114_v1 }
 0x1c2   :  { %s154_s28 = spop %153 }
 0x1c3   :  { %v116_v3 = vstv %s154_s28  ;;  %s156_s29 = spop %155 }
 0x1c4   :  { %118 = vst.msk [vmem:[#allocation2] sm:$0x1] %vm117_vm6, %v116_v3  ;;  %v119_v4 = vstv %s156_s29 }
 0x1c5   :  { %120 = vst.msk [vmem:[#allocation4] sm:$0x1] %vm117_vm6, %v119_v4  ;;  %131 = dma.vmem_to_hbm [thread:$0]  %s127_s1, 16, %s129_s22, [#allocation3]  }
 0x1c6   :  { %142 = dma.vmem_to_hbm [thread:$0]  %s138_s24, 16, %s140_s27, [#allocation5]  }
 0x1c7   :  { %218 = dma.done.wait [#allocation3], 16  }
 0x1c8   :  { %219 = vsyncadd [#allocation3], 4294967280 }
 0x1c9   :  { %220 = dma.done.wait [#allocation5], 16  }
 0x1ca   :  { %221 = vsyncadd [#allocation5], 4294967280 }
 0x1cb   :  { %151 = vsyncpa [#allocation3], 1 }
 0x1cc   :  { %152 = vsyncpa [#allocation5], 1 }

</bundles_post_ra>
